<compile_context>
chip_gen: v6e
topology: v6e:2x2x1
jax: 0.10.0
libtpu: 0.0.40
codegen_flags: <defaults>
</compile_context>

<pallas_src>
import functools
import math

import jax
import jax.numpy as jnp
from jax.experimental import pallas as pl
from jax.experimental.pallas import tpu as pltpu

_LANES = 128
_SUBLANES = 8
_VREG_ELEMS = _SUBLANES * _LANES          # 1024 elements = one f32 vreg
_MAX_BLOCK_ROWS = 4096                    # (4096, 128) f32 block = 2 MiB
_VMEM_LIMIT_BYTES = 48 << 20


# ----------------------------------------------------------------------------
# Fused reduction kernel factory.
#
# Each "task" is either
#   ("sq",  rows, block_rows, nblk) -> two input refs (a, b), accumulates sum((a-b)^2)
#   ("log", rows, block_rows, nblk) -> one input ref  (x),    accumulates sum(log(x))
# All tasks share one grid axis of `nblocks` steps (the max over tasks).
# ----------------------------------------------------------------------------
def _make_fused_kernel(task_meta, nblocks):
    n_tasks = len(task_meta)
    n_in = sum(2 if kind == "sq" else 1 for (kind, _, _, _) in task_meta)

    def kernel(*refs):
        in_refs = refs[:n_in]
        o_ref = refs[n_in]
        acc_refs = refs[n_in + 1:]
        j = pl.program_id(0)

        def init():
            for acc in acc_refs:
                acc[...] = jnp.zeros_like(acc)

        if nblocks == 1:
            init()
        else:
            pl.when(j == 0)(init)

        pos = 0
        for t, (kind, rows, brows, nblk) in enumerate(task_meta):
            nref = 2 if kind == "sq" else 1
            trefs = in_refs[pos:pos + nref]
            pos += nref
            acc = acc_refs[t]
            rows_last = rows - (nblk - 1) * brows   # rows in the last real block

            def contrib(mask_rows, kind=kind, trefs=trefs, brows=brows):
                if kind == "sq":
                    vals = (trefs[0][...].astype(jnp.float32)
                            - trefs[1][...].astype(jnp.float32))
                    if mask_rows is not None:
                        rid = jax.lax.broadcasted_iota(jnp.int32, (brows, _LANES), 0)
                        vals = jnp.where(rid < mask_rows, vals, 0.0)   # 0^2 neutral
                    return vals * vals
                x = trefs[0][...].astype(jnp.float32)
                if mask_rows is not None:
                    rid = jax.lax.broadcasted_iota(jnp.int32, (brows, _LANES), 0)
                    x = jnp.where(rid < mask_rows, x, 1.0)             # log(1) neutral
                return jnp.log(x)

            def add(vals, acc=acc):
                # Pure VPU fold of the block onto one vreg-shaped accumulator.
                acc[...] += vals.reshape(-1, _SUBLANES, _LANES).sum(axis=0)

            if nblk == nblocks and rows_last == brows:
                # Fast path: every grid step is a full, in-range block (no mask).
                add(contrib(None))
            else:
                if nblk > 1:
                    @pl.when(j < nblk - 1)
                    def _(add=add, contrib=contrib):
                        add(contrib(None))

                mask_rows = None if rows_last == brows else rows_last

                @pl.when(j == nblk - 1)
                def _(add=add, contrib=contrib, mask_rows=mask_rows):
                    add(contrib(mask_rows))
                # j > nblk - 1: duplicate (clamped) block -> skipped entirely.

        def finalize():
            # Cross-sublane fold in-kernel -> one lane-dense row per task.
            for t in range(n_tasks):
                o_ref[t:t + 1, :] = jnp.sum(acc_refs[t][...], axis=0, keepdims=True)

        if nblocks == 1:
            finalize()
        else:
            pl.when(j == nblocks - 1)(finalize)

    return kernel


def _launch_fused(kernel_tasks):
    """kernel_tasks: list of (kind, slabs); slabs are lane-dense [rows,128] arrays
    with rows > 0 and rows % 8 == 0. Returns (n_tasks, 128) f32 partial sums."""
    task_meta = []
    in_arrays = []
    nblocks = 1
    flops = transcendentals = bytes_accessed = 0
    for kind, slabs in kernel_tasks:
        rows = slabs[0].shape[0]
        brows = min(_MAX_BLOCK_ROWS, rows)
        nblk = -(-rows // brows)
        nblocks = max(nblocks, nblk)
        task_meta.append((kind, rows, brows, nblk))
        elems = rows * _LANES
        if kind == "sq":
            flops += 3 * elems
        else:
            flops += elems
            transcendentals += elems
        for s in slabs:
            in_arrays.append(s)
            bytes_accessed += s.size * s.dtype.itemsize

    # Build the per-input BlockSpecs (index maps clamp to each input's last block).
    in_specs = []
    for (kind, rows, brows, nblk), (_, slabs) in zip(task_meta, kernel_tasks):
        if nblk == nblocks:
            imap = lambda j: (j, 0)
        else:
            imap = lambda j, last=nblk - 1: (jnp.minimum(j, last), 0)
        for _ in slabs:
            in_specs.append(pl.BlockSpec((brows, _LANES), imap))

    n_tasks = len(task_meta)
    kernel = _make_fused_kernel(tuple(task_meta), nblocks)
    return pl.pallas_call(
        kernel,
        out_shape=jax.ShapeDtypeStruct((n_tasks, _LANES), jnp.float32),
        grid_spec=pltpu.PrefetchScalarGridSpec(
            num_scalar_prefetch=0,
            grid=(nblocks,),
            in_specs=in_specs,
            out_specs=pl.BlockSpec((n_tasks, _LANES), lambda j: (0, 0)),
            scratch_shapes=[pltpu.VMEM((_SUBLANES, _LANES), jnp.float32)
                            for _ in range(n_tasks)],
        ),
        compiler_params=pltpu.CompilerParams(
            dimension_semantics=("arbitrary",),
            vmem_limit_bytes=_VMEM_LIMIT_BYTES),
        cost_estimate=pl.CostEstimate(
            flops=flops, transcendentals=transcendentals,
            bytes_accessed=bytes_accessed),
    )(*in_arrays)


# ----------------------------------------------------------------------------
# Wrapper-side slab construction (no concatenate / no padding copies).
# ----------------------------------------------------------------------------
def _split_slab(x):
    """Split into a lane-dense [rows,128] main slab (rows % 8 == 0, possibly None)
    plus a ragged tail (< 1024 elements, possibly None)."""
    n = x.size
    rows = (n // _VREG_ELEMS) * _SUBLANES
    main = rows * _LANES
    if rows == 0:
        return None, x.reshape(-1)
    if main == n:
        return x.reshape(rows, _LANES), None
    flat = x.reshape(-1)
    return flat[:main].reshape(rows, _LANES), flat[main:]


def _fused_sums_impl(x_hat, target, liks):
    specs = [("sq", (x_hat, target))] + [("log", (lk,)) for lk in liks]
    totals = [jnp.float32(0.0) for _ in specs]
    kernel_tasks = []
    kernel_slots = []
    for i, (kind, arrs) in enumerate(specs):
        parts = [_split_slab(a) for a in arrs]
        # Ragged tails (and tensors smaller than one vreg): plain jnp, negligible.
        if kind == "sq":
            ta, tb = parts[0][1], parts[1][1]
            if ta is not None:
                d = ta.astype(jnp.float32) - tb.astype(jnp.float32)
                totals[i] = totals[i] + jnp.sum(d * d)
        else:
            tx = parts[0][1]
            if tx is not None:
                totals[i] = totals[i] + jnp.sum(jnp.log(tx.astype(jnp.float32)))
        slabs = tuple(p[0] for p in parts)
        if slabs[0] is not None:
            kernel_tasks.append((kind, slabs))
            kernel_slots.append(i)

    if kernel_tasks:
        partials = _launch_fused(kernel_tasks)        # (n_kernel_tasks, 128)
        sums = jnp.sum(partials, axis=-1)             # tiny, fused by XLA
        for k, i in enumerate(kernel_slots):
            totals[i] = totals[i] + sums[k]

    return totals[0], tuple(totals[1:])


@jax.custom_vjp
def _fused_sums(x_hat, target, liks):
    return _fused_sums_impl(x_hat, target, liks)


def _fused_sums_fwd(x_hat, target, liks):
    return _fused_sums_impl(x_hat, target, liks), (x_hat, target, liks)


def _fused_sums_bwd(res, cts):
    x_hat, target, liks = res
    g_sq, g_logs = cts
    diff = x_hat.astype(jnp.float32) - target.astype(jnp.float32)
    gx = (2.0 * g_sq) * diff
    g_liks = tuple((g / lk.astype(jnp.float32)).astype(lk.dtype)
                   for g, lk in zip(g_logs, liks))
    return gx.astype(x_hat.dtype), (-gx).astype(target.dtype), g_liks


_fused_sums.defvjp(_fused_sums_fwd, _fused_sums_bwd)


# ----------------------------------------------------------------------------
# RateDistortionLoss forward
# ----------------------------------------------------------------------------
_QUALITY_TO_LAMBDA = {1: 0.0018, 2: 0.0035, 3: 0.0067, 4: 0.013,
                      5: 0.025, 6: 0.0483, 7: 0.0932, 8: 0.18}


@functools.partial(jax.jit, static_argnames="quality")
def rate_distortion_loss(output, target, quality):
    """output: {'x_hat': [N,C,H,W], 'likelihoods': {name: array}}, target: [N,C,H,W]."""
    lmbda = _QUALITY_TO_LAMBDA[quality]
    N, _, H, W = target.shape
    num_pixels = N * H * W

    x_hat = output['x_hat']
    liks = tuple(output['likelihoods'].values())
    sq_sum, log_sums = _fused_sums(x_hat, target, liks)

    bpp_loss = sum(log_sums, jnp.float32(0.0)) / (-math.log(2) * num_pixels)
    mse_loss = sq_sum / jnp.float32(x_hat.size)
    loss = lmbda * (255.0 ** 2) * mse_loss + bpp_loss
    return {'bpp_loss': bpp_loss, 'mse_loss': mse_loss, 'loss': loss}


if __name__ == "__main__":
    key = jax.random.PRNGKey(0)
    k1, k2, k3, k4 = jax.random.split(key, 4)

    N, C, H, W = 2, 3, 32, 32
    target = jax.random.uniform(k1, (N, C, H, W), dtype=jnp.float32)
    x_hat = target + 0.05 * jax.random.normal(k2, (N, C, H, W), dtype=jnp.float32)

    # Mean-scale hyperprior emits two likelihood tensors ('y' latent, 'z'
    # hyper-latent); values in (0, 1].
    y_lik = jax.random.uniform(k3, (N, 32, H // 4, W // 4), dtype=jnp.float32,
                               minval=0.05, maxval=1.0)
    z_lik = jax.random.uniform(k4, (N, 8, H // 8, W // 8), dtype=jnp.float32,
                               minval=0.05, maxval=1.0)

    output = {'x_hat': x_hat, 'likelihoods': {'y': y_lik, 'z': z_lik}}

    out = rate_distortion_loss(output, target, quality=3)
    jax.block_until_ready(out['loss'])

    # Reference check in plain JAX.
    num_pixels = N * H * W
    bpp_ref = (jnp.sum(jnp.log(y_lik)) + jnp.sum(jnp.log(z_lik))) / (-math.log(2) * num_pixels)
    mse_ref = jnp.mean((x_hat - target) ** 2)
    loss_ref = 0.0067 * 255.0 ** 2 * mse_ref + bpp_ref

    assert jnp.allclose(out['bpp_loss'], bpp_ref, rtol=1e-5, atol=1e-5)
    assert jnp.allclose(out['mse_loss'], mse_ref, rtol=1e-5, atol=1e-7)
    assert jnp.allclose(out['loss'], loss_ref, rtol=1e-5, atol=1e-5)

    # Gradient check through the custom_vjp (training path).
    def loss_wrt_xhat(xh):
        return rate_distortion_loss({'x_hat': xh, 'likelihoods': output['likelihoods']},
                                    target, quality=3)['loss']

    g = jax.grad(loss_wrt_xhat)(x_hat)
    jax.block_until_ready(g)
    g_ref = 0.0067 * (255.0 ** 2) * 2.0 * (x_hat - target) / x_hat.size
    assert jnp.allclose(g, g_ref, rtol=1e-4, atol=1e-7)

    print("KERNEL_OK")
</pallas_src>

<mosaic_0001>
module attributes {stable_mosaic.version = 11 : i64} {
  func.func @kernel(%arg0: i32, %arg1: memref<48x128xf32, #tpu.memory_space<vmem>>, %arg2: memref<48x128xf32, #tpu.memory_space<vmem>>, %arg3: memref<32x128xf32, #tpu.memory_space<vmem>>, %arg4: memref<2x128xf32, #tpu.memory_space<vmem>>, %arg5: memref<8x128xf32, #tpu.memory_space<vmem>>, %arg6: memref<8x128xf32, #tpu.memory_space<vmem>>) attributes {dimension_semantics = [#tpu.dimension_semantics<arbitrary>], iteration_bounds = array<i64: 1>, scalar_prefetch = 0 : i64, scratch_operands = 2 : i64, tpu.core_type = #tpu.core_type<tc>, window_params = [{transform_indices = @transform_0, window_bounds = array<i64: 48, 128>}, {transform_indices = @transform_1, window_bounds = array<i64: 48, 128>}, {transform_indices = @transform_2, window_bounds = array<i64: 32, 128>}, {pipeline_mode = #tpu.pipeline_mode<synchronous>, transform_indices = @transform_3, window_bounds = array<i64: 2, 128>}]} {
    %cst = arith.constant 0.000000e+00 : f32
    %0 = vector.broadcast %cst : f32 to vector<8x128xf32>
    %c0 = arith.constant 0 : index
    %c0_0 = arith.constant 0 : index
    %1 = vector.load %arg5[%c0, %c0_0] : memref<8x128xf32, #tpu.memory_space<vmem>>, vector<8x128xf32>
    tpu.vector_store %arg5[%c0, %c0_0], %0 {strides = array<i32>} : memref<8x128xf32, #tpu.memory_space<vmem>>, vector<8x128xf32>,
    %cst_1 = arith.constant 0.000000e+00 : f32
    %2 = vector.broadcast %cst_1 : f32 to vector<8x128xf32>
    %c0_2 = arith.constant 0 : index
    %c0_3 = arith.constant 0 : index
    %3 = vector.load %arg6[%c0_2, %c0_3] : memref<8x128xf32, #tpu.memory_space<vmem>>, vector<8x128xf32>
    tpu.vector_store %arg6[%c0_2, %c0_3], %2 {strides = array<i32>} : memref<8x128xf32, #tpu.memory_space<vmem>>, vector<8x128xf32>,
    %c0_4 = arith.constant 0 : index
    %c0_5 = arith.constant 0 : index
    %4 = vector.load %arg1[%c0_4, %c0_5] : memref<48x128xf32, #tpu.memory_space<vmem>>, vector<48x128xf32>
    %c0_6 = arith.constant 0 : index
    %c0_7 = arith.constant 0 : index
    %5 = vector.load %arg2[%c0_6, %c0_7] : memref<48x128xf32, #tpu.memory_space<vmem>>, vector<48x128xf32>
    %6 = arith.subf %4, %5 : vector<48x128xf32>
    %7 = arith.mulf %6, %6 : vector<48x128xf32>
    %c0_8 = arith.constant 0 : index
    %c0_9 = arith.constant 0 : index
    %8 = vector.load %arg5[%c0_8, %c0_9] : memref<8x128xf32, #tpu.memory_space<vmem>>, vector<8x128xf32>
    %9 = vector.shape_cast %7 : vector<48x128xf32> to vector<6x8x128xf32>
    %cst_10 = arith.constant dense<0.000000e+00> : vector<8x128xf32>
    %10 = vector.multi_reduction <add>, %9, %cst_10 [0] : vector<6x8x128xf32> to vector<8x128xf32>
    %11 = arith.addf %8, %10 : vector<8x128xf32>
    %c0_11 = arith.constant 0 : index
    %c0_12 = arith.constant 0 : index
    %12 = vector.load %arg5[%c0_11, %c0_12] : memref<8x128xf32, #tpu.memory_space<vmem>>, vector<8x128xf32>
    tpu.vector_store %arg5[%c0_11, %c0_12], %11 {strides = array<i32>} : memref<8x128xf32, #tpu.memory_space<vmem>>, vector<8x128xf32>,
    %c0_13 = arith.constant 0 : index
    %c0_14 = arith.constant 0 : index
    %13 = vector.load %arg3[%c0_13, %c0_14] : memref<32x128xf32, #tpu.memory_space<vmem>>, vector<32x128xf32>
    %14 = math.log %13 : vector<32x128xf32>
    %c0_15 = arith.constant 0 : index
    %c0_16 = arith.constant 0 : index
    %15 = vector.load %arg6[%c0_15, %c0_16] : memref<8x128xf32, #tpu.memory_space<vmem>>, vector<8x128xf32>
    %16 = vector.shape_cast %14 : vector<32x128xf32> to vector<4x8x128xf32>
    %cst_17 = arith.constant dense<0.000000e+00> : vector<8x128xf32>
    %17 = vector.multi_reduction <add>, %16, %cst_17 [0] : vector<4x8x128xf32> to vector<8x128xf32>
    %18 = arith.addf %15, %17 : vector<8x128xf32>
    %c0_18 = arith.constant 0 : index
    %c0_19 = arith.constant 0 : index
    %19 = vector.load %arg6[%c0_18, %c0_19] : memref<8x128xf32, #tpu.memory_space<vmem>>, vector<8x128xf32>
    tpu.vector_store %arg6[%c0_18, %c0_19], %18 {strides = array<i32>} : memref<8x128xf32, #tpu.memory_space<vmem>>, vector<8x128xf32>,
    %c0_20 = arith.constant 0 : index
    %c0_21 = arith.constant 0 : index
    %20 = vector.load %arg5[%c0_20, %c0_21] : memref<8x128xf32, #tpu.memory_space<vmem>>, vector<8x128xf32>
    %cst_22 = arith.constant dense<0.000000e+00> : vector<128xf32>
    %21 = vector.multi_reduction <add>, %20, %cst_22 [0] : vector<8x128xf32> to vector<128xf32>
    %22 = vector.shape_cast %21 : vector<128xf32> to vector<1x128xf32>
    %c0_23 = arith.constant 0 : index
    %c0_24 = arith.constant 0 : index
    %23 = vector.load %arg4[%c0_23, %c0_24] : memref<2x128xf32, #tpu.memory_space<vmem>>, vector<1x128xf32>
    tpu.vector_store %arg4[%c0_23, %c0_24], %22 {strides = array<i32>} : memref<2x128xf32, #tpu.memory_space<vmem>>, vector<1x128xf32>,
    %c0_25 = arith.constant 0 : index
    %c0_26 = arith.constant 0 : index
    %24 = vector.load %arg6[%c0_25, %c0_26] : memref<8x128xf32, #tpu.memory_space<vmem>>, vector<8x128xf32>
    %cst_27 = arith.constant dense<0.000000e+00> : vector<128xf32>
    %25 = vector.multi_reduction <add>, %24, %cst_27 [0] : vector<8x128xf32> to vector<128xf32>
    %26 = vector.shape_cast %25 : vector<128xf32> to vector<1x128xf32>
    %c1 = arith.constant 1 : index
    %c0_28 = arith.constant 0 : index
    %27 = vector.load %arg4[%c1, %c0_28] : memref<2x128xf32, #tpu.memory_space<vmem>>, vector<1x128xf32>
    tpu.vector_store %arg4[%c1, %c0_28], %26 {strides = array<i32>} : memref<2x128xf32, #tpu.memory_space<vmem>>, vector<1x128xf32>,
    return
  }
  func.func @transform_0(%arg0: i32) -> (i32, i32) {
    %c0_i32 = arith.constant 0 : i32
    %c0_i32_0 = arith.constant 0 : i32
    return %arg0, %c0_i32 : i32, i32
  }
  func.func @transform_1(%arg0: i32) -> (i32, i32) {
    %c0_i32 = arith.constant 0 : i32
    %c0_i32_0 = arith.constant 0 : i32
    return %arg0, %c0_i32 : i32, i32
  }
  func.func @transform_2(%arg0: i32) -> (i32, i32) {
    %c0_i32 = arith.constant 0 : i32
    %c0_i32_0 = arith.constant 0 : i32
    return %arg0, %c0_i32 : i32, i32
  }
  func.func @transform_3(%arg0: i32) -> (i32, i32) {
    %c0_i32 = arith.constant 0 : i32
    %c0_i32_0 = arith.constant 0 : i32
    %c0_i32_1 = arith.constant 0 : i32
    return %c0_i32, %c0_i32_0 : i32, i32
  }
}

</mosaic_0001>

<bundles_post_ra>
// kernel: rate_distortion_loss.1
= control target key start
LH: loop header
LB: loop body
LE: loop exit
PB: predicated region body
PF: predicated region fallthrough
CT: control target
= control target key end

     0   :  { %s168_s0 = inlined_call_operand.vmem [shape: f32[48,128], index: 0, kind: input, shape index: {}]   ;;  %s169_s1 = inlined_call_operand.vmem [shape: f32[48,128], index: 1, kind: input, shape index: {}]   ;;  %s170_s2 = inlined_call_operand.vmem [shape: f32[32,128], index: 2, kind: input, shape index: {}]   ;;  %s171_s3 = inlined_call_operand.vmem [shape: f32[2,128], index: 3, kind: output, shape index: {}]  }
   0x1   :  { %v16_v0 = vld [vmem:[%s168_s0] sm:$0xff]  ;;  %v17_v1 = vld [vmem:[%s168_s0 + $0x8] sm:$0xff]  ;;  %v18_v2 = vld [vmem:[%s168_s0 + $0x10] sm:$0xff] }
   0x2   :  { %v19_v3 = vld [vmem:[%s168_s0 + $0x18] sm:$0xff]  ;;  %v20_v4 = vld [vmem:[%s168_s0 + $0x20] sm:$0xff]  ;;  %v21_v5 = vld [vmem:[%s168_s0 + $0x28] sm:$0xff] }
   0x3   :  { %v22_v6 = vld [vmem:[%s169_s1] sm:$0xff]  ;;  %v23_v7 = vld [vmem:[%s169_s1 + $0x8] sm:$0xff]  ;;  %v24_v8 = vld [vmem:[%s169_s1 + $0x10] sm:$0xff] }
   0x4   :  { %v25_v9 = vld [vmem:[%s169_s1 + $0x18] sm:$0xff]  ;;  %v26_v10 = vld [vmem:[%s169_s1 + $0x20] sm:$0xff]  ;;  %v27_v11 = vld [vmem:[%s169_s1 + $0x28] sm:$0xff]  ;;  %v28_v12 = vsub.f32 %v16_v0, %v22_v6  ;;  %v29_v13 = vsub.f32 %v17_v1, %v23_v7  ;;  %v30_v14 = vsub.f32 %v18_v2, %v24_v8 }
   0x5   :  { %v31_v15 = vsub.f32 %v19_v3, %v25_v9  ;;  %v32_v16 = vsub.f32 %v20_v4, %v26_v10  ;;  %v48_v17 = vld [vmem:[%s170_s2] sm:$0xff]  ;;  %v49_v18 = vld [vmem:[%s170_s2 + $0x8] sm:$0xff]  ;;  %v50_v19 = vld [vmem:[%s170_s2 + $0x10] sm:$0xff]  ;;  %v33_v24 = vsub.f32 %v21_v5, %v27_v11 }
   0x6   :  { %v34_v20 = vmul.f32 %v28_v12, %v28_v12  ;;  %v35_v21 = vmul.f32 %v29_v13, %v29_v13  ;;  %v36_v22 = vmul.f32 %v30_v14, %v30_v14  ;;  %v51_v23 = vld [vmem:[%s170_s2 + $0x18] sm:$0xff]  ;;  %86 = vlog2.f32 %v48_v17 }
   0x7   :  { %88 = vlog2.f32 %v49_v18  ;;  %v37_v25 = vmul.f32 %v31_v15, %v31_v15  ;;  %v38_v27 = vmul.f32 %v32_v16, %v32_v16  ;;  %v39_v29 = vmul.f32 %v33_v24, %v33_v24 }
   0x8   :  { %v41_v26 = vadd.f32 %v35_v21, %v34_v20  ;;  %90 = vlog2.f32 %v50_v19 }
   0x9   :  { %92 = vlog2.f32 %v51_v23 }
   0xa   :  { %v42_v28 = vadd.f32 %v41_v26, %v36_v22 }
   0xc   :  { %v43_v30 = vadd.f32 %v42_v28, %v37_v25 }
   0xe   :  { %v44_v31 = vadd.f32 %v43_v30, %v38_v27 }
  0x10   :  { %v45_v32 = vadd.f32 %v44_v31, %v39_v29 }
  0x12   :  { %v67_v33 = vrot.slane %v45_v32, 4 }
  0x13   :  { %v87_v34 = vpop.eup %86 }
  0x14   :  { %v89_v35 = vpop.eup %88  ;;  %v68_v36 = vadd.f32 %v67_v33, %v45_v32  ;;  %v53_v37 = vmul.f32 0.6931472, %v87_v34 }
  0x15   :  { %v91_v38 = vpop.eup %90  ;;  %v55_v39 = vmul.f32 0.6931472, %v89_v35 }
  0x16   :  { %v93_v40 = vpop.eup %92  ;;  %v69_v41 = vrot.slane %v68_v36, 2  ;;  %v57_v42 = vmul.f32 0.6931472, %v91_v38 }
  0x17   :  { %v59_v43 = vmul.f32 0.6931472, %v93_v40  ;;  %v61_v44 = vadd.f32 %v55_v39, %v53_v37 }
  0x18   :  { %v70_v45 = vadd.f32 %v69_v41, %v68_v36 }
  0x19   :  { %v62_v46 = vadd.f32 %v61_v44, %v57_v42 }
  0x1a   :  { %v71_v47 = vrot.slane %v70_v45, 1 }
  0x1b   :  { %v63_v48 = vadd.f32 %v62_v46, %v59_v43 }
  0x1c   :  { %v72_v49 = vadd.f32 %v71_v47, %v70_v45 }
  0x1d   :  { %v75_v50 = vrot.slane %v63_v48, 4 }
  0x1e   :  { %73 = vst [vmem:[%s171_s3] sm:$0x1] %v72_v49 }
  0x1f   :  { %v76_v51 = vadd.f32 %v75_v50, %v63_v48 }
  0x21   :  { %v77_v52 = vrot.slane %v76_v51, 2 }
  0x23   :  { %v78_v53 = vadd.f32 %v77_v52, %v76_v51 }
  0x25   :  { %v79_v54 = vrot.slane %v78_v53, 1 }
  0x27   :  { %v80_v55 = vadd.f32 %v79_v54, %v78_v53 }
  0x29   :  { %81 = vst [vmem:[%s171_s3 + $0x1] sm:$0x1] %v80_v55 }

</bundles_post_ra>
